<compile_context>
chip_gen: v6e
topology: v6e:2x2x1
jax: 0.10.0
libtpu: 0.0.40
codegen_flags: <defaults>
</compile_context>

<pallas_src>
import jax
import jax.numpy as jnp
from jax.experimental import pallas as pl
from jax.experimental.pallas import tpu as pltpu

LANE = 128      # lane-dense feature padding (feature dims 7 -> 128)
N_LAYERS = 3
MAX_TM = 1024   # max batch rows per grid step


def _mlp_kernel(x_ref, w_ref, b_ref, o_ref):
    # x_ref: (TM, 128), w_ref: (3, 128, 128), b_ref: (8, 128), o_ref: (TM, 128)
    h = x_ref[...]
    for l in range(N_LAYERS):                       # statically unrolled
        h = jnp.dot(h, w_ref[l], preferred_element_type=jnp.float32) + b_ref[l]
        h = jnp.maximum(h, 0.0)
    o_ref[...] = h


def make_net_params(n_features=7, nodes=(7, 7), output_nodes=7):
    """Deterministic init matching PyTorch __init__: identity weights, zero bias.

    Weights are stored transposed as (in, out) so the kernel computes x @ W + b,
    which equals PyTorch's x @ W.T + b for W stored (out, in).
    """
    n_nodes = [n_features] + list(nodes) + [output_nodes]
    params = []
    for i in range(len(n_nodes) - 1):
        in_dim, out_dim = n_nodes[i], n_nodes[i + 1]
        w_t = jnp.eye(out_dim, in_dim, dtype=jnp.float32).T   # (in, out)
        b = jnp.zeros((out_dim,), dtype=jnp.float32)
        params.append((w_t, b))
    return params


def pack_params(params):
    """Stack + zero-pad the three (W, b) pairs into two lane-dense operands."""
    w_stack = jnp.zeros((N_LAYERS, LANE, LANE), dtype=jnp.float32)
    b_stack = jnp.zeros((8, LANE), dtype=jnp.float32)   # 8 rows -> one (8,128) tile
    for l, (w_t, b) in enumerate(params):
        i, o = w_t.shape
        w_stack = w_stack.at[l, :i, :o].set(w_t)
        b_stack = b_stack.at[l, :o].set(b)
    return w_stack, b_stack


def _round_up(v, m):
    return (v + m - 1) // m * m


@jax.jit
def _net_forward_packed(x_pad, w_stack, b_stack):
    pb = x_pad.shape[0]
    tm = min(MAX_TM, pb)
    return pl.pallas_call(
        _mlp_kernel,
        out_shape=jax.ShapeDtypeStruct((pb, LANE), jnp.float32),
        grid_spec=pltpu.PrefetchScalarGridSpec(
            num_scalar_prefetch=0,
            grid=(pb // tm,),
            in_specs=[
                pl.BlockSpec((tm, LANE), lambda i: (i, 0)),                 # x rows
                pl.BlockSpec((N_LAYERS, LANE, LANE), lambda i: (0, 0, 0)),  # weights (VMEM-resident)
                pl.BlockSpec((8, LANE), lambda i: (0, 0)),                  # biases  (VMEM-resident)
            ],
            out_specs=pl.BlockSpec((tm, LANE), lambda i: (i, 0)),
        ),
        compiler_params=pltpu.CompilerParams(
            dimension_semantics=("parallel",),   # shard batch tiles across TCs on v7x
        ),
    )(x_pad, w_stack, b_stack)


def net_forward(x, params):
    """x: (batch, n_features) float32 -> (batch, output_nodes) float32."""
    batch, n_in = x.shape
    out_dim = params[-1][0].shape[1]

    w_stack, b_stack = pack_params(params)

    # Row-tile the batch: pad so every tile is full and (8,128)-aligned.
    tm = min(MAX_TM, _round_up(batch, 8))
    pb = _round_up(batch, tm)
    x_pad = jnp.zeros((pb, LANE), dtype=jnp.float32).at[:batch, :n_in].set(x)

    out_pad = _net_forward_packed(x_pad, w_stack, b_stack)
    return out_pad[:batch, :out_dim]


def _ref_forward(x, params):
    """Plain-JAX reference of the PyTorch forward."""
    h = x
    for w_t, b in params:
        h = jnp.maximum(h @ w_t + b, 0.0)
    return h


if __name__ == "__main__":
    key = jax.random.PRNGKey(0)
    params = make_net_params(n_features=7, nodes=(7, 7), output_nodes=7)

    # Small-batch check (single grid step).
    batch, n_features = 8, 7
    x = jax.random.normal(key, (batch, n_features), dtype=jnp.float32)
    out = jax.block_until_ready(net_forward(x, params))
    ref = _ref_forward(x, params)
    assert out.shape == (batch, 7)
    assert jnp.allclose(out, ref, atol=1e-6), "mismatch vs reference (small batch)"

    # Larger batch exercises the row grid + padding path (still tiny compute).
    x2 = jax.random.normal(jax.random.PRNGKey(1), (600, n_features), dtype=jnp.float32)
    out2 = jax.block_until_ready(net_forward(x2, params))
    ref2 = _ref_forward(x2, params)
    assert out2.shape == (600, 7)
    assert jnp.allclose(out2, ref2, atol=1e-6), "mismatch vs reference (gridded batch)"

    print("KERNEL_OK")
</pallas_src>

<mosaic_0001>
module attributes {stable_mosaic.version = 11 : i64} {
  func.func @_mlp_kernel(%arg0: i32, %arg1: memref<8x128xf32, #tpu.memory_space<vmem>>, %arg2: memref<3x128x128xf32, #tpu.memory_space<vmem>>, %arg3: memref<8x128xf32, #tpu.memory_space<vmem>>, %arg4: memref<8x128xf32, #tpu.memory_space<vmem>>) attributes {dimension_semantics = [#tpu.dimension_semantics<parallel>], iteration_bounds = array<i64: 1>, scalar_prefetch = 0 : i64, scratch_operands = 0 : i64, tpu.core_type = #tpu.core_type<tc>, window_params = [{transform_indices = @transform_0, window_bounds = array<i64: 8, 128>}, {pipeline_mode = #tpu.pipeline_mode<synchronous>, transform_indices = @transform_1, window_bounds = array<i64: 3, 128, 128>}, {pipeline_mode = #tpu.pipeline_mode<synchronous>, transform_indices = @transform_2, window_bounds = array<i64: 8, 128>}, {transform_indices = @transform_3, window_bounds = array<i64: 8, 128>}]} {
    %c0 = arith.constant 0 : index
    %c0_0 = arith.constant 0 : index
    %0 = vector.load %arg1[%c0, %c0_0] : memref<8x128xf32, #tpu.memory_space<vmem>>, vector<8x128xf32>
    %c0_1 = arith.constant 0 : index
    %c0_2 = arith.constant 0 : index
    %c0_3 = arith.constant 0 : index
    %1 = vector.load %arg2[%c0_1, %c0_2, %c0_3] : memref<3x128x128xf32, #tpu.memory_space<vmem>>, vector<1x128x128xf32>
    %2 = vector.shape_cast %1 : vector<1x128x128xf32> to vector<128x128xf32>
    %cst = arith.constant dense<0.000000e+00> : vector<8x128xf32>
    %3 = tpu.matmul %0, %2, %cst {dimension_numbers = #tpu.dot_dimension_numbers<[1], [0], [0], [1], [0, 0, 1, 1], [], []>} : vector<8x128xf32>, vector<128x128xf32>, vector<8x128xf32> -> vector<8x128xf32>
    %c0_4 = arith.constant 0 : index
    %c0_5 = arith.constant 0 : index
    %4 = vector.load %arg3[%c0_4, %c0_5] : memref<8x128xf32, #tpu.memory_space<vmem>>, vector<1x128xf32>
    %5 = vector.shape_cast %4 : vector<1x128xf32> to vector<128xf32>
    %6 = vector.shape_cast %5 : vector<128xf32> to vector<1x128xf32>
    %7 = vector.broadcast %6 : vector<1x128xf32> to vector<8x128xf32>
    %8 = arith.addf %3, %7 : vector<8x128xf32>
    %cst_6 = arith.constant 0.000000e+00 : f32
    %9 = vector.broadcast %cst_6 : f32 to vector<8x128xf32>
    %10 = arith.maximumf %8, %9 : vector<8x128xf32>
    %c1 = arith.constant 1 : index
    %c0_7 = arith.constant 0 : index
    %c0_8 = arith.constant 0 : index
    %11 = vector.load %arg2[%c1, %c0_7, %c0_8] : memref<3x128x128xf32, #tpu.memory_space<vmem>>, vector<1x128x128xf32>
    %12 = vector.shape_cast %11 : vector<1x128x128xf32> to vector<128x128xf32>
    %cst_9 = arith.constant dense<0.000000e+00> : vector<8x128xf32>
    %13 = tpu.matmul %10, %12, %cst_9 {dimension_numbers = #tpu.dot_dimension_numbers<[1], [0], [0], [1], [0, 0, 1, 1], [], []>} : vector<8x128xf32>, vector<128x128xf32>, vector<8x128xf32> -> vector<8x128xf32>
    %c1_10 = arith.constant 1 : index
    %c0_11 = arith.constant 0 : index
    %14 = vector.load %arg3[%c1_10, %c0_11] : memref<8x128xf32, #tpu.memory_space<vmem>>, vector<1x128xf32>
    %15 = vector.shape_cast %14 : vector<1x128xf32> to vector<128xf32>
    %16 = vector.shape_cast %15 : vector<128xf32> to vector<1x128xf32>
    %17 = vector.broadcast %16 : vector<1x128xf32> to vector<8x128xf32>
    %18 = arith.addf %13, %17 : vector<8x128xf32>
    %cst_12 = arith.constant 0.000000e+00 : f32
    %19 = vector.broadcast %cst_12 : f32 to vector<8x128xf32>
    %20 = arith.maximumf %18, %19 : vector<8x128xf32>
    %c2 = arith.constant 2 : index
    %c0_13 = arith.constant 0 : index
    %c0_14 = arith.constant 0 : index
    %21 = vector.load %arg2[%c2, %c0_13, %c0_14] : memref<3x128x128xf32, #tpu.memory_space<vmem>>, vector<1x128x128xf32>
    %22 = vector.shape_cast %21 : vector<1x128x128xf32> to vector<128x128xf32>
    %cst_15 = arith.constant dense<0.000000e+00> : vector<8x128xf32>
    %23 = tpu.matmul %20, %22, %cst_15 {dimension_numbers = #tpu.dot_dimension_numbers<[1], [0], [0], [1], [0, 0, 1, 1], [], []>} : vector<8x128xf32>, vector<128x128xf32>, vector<8x128xf32> -> vector<8x128xf32>
    %c2_16 = arith.constant 2 : index
    %c0_17 = arith.constant 0 : index
    %24 = vector.load %arg3[%c2_16, %c0_17] : memref<8x128xf32, #tpu.memory_space<vmem>>, vector<1x128xf32>
    %25 = vector.shape_cast %24 : vector<1x128xf32> to vector<128xf32>
    %26 = vector.shape_cast %25 : vector<128xf32> to vector<1x128xf32>
    %27 = vector.broadcast %26 : vector<1x128xf32> to vector<8x128xf32>
    %28 = arith.addf %23, %27 : vector<8x128xf32>
    %cst_18 = arith.constant 0.000000e+00 : f32
    %29 = vector.broadcast %cst_18 : f32 to vector<8x128xf32>
    %30 = arith.maximumf %28, %29 : vector<8x128xf32>
    %c0_19 = arith.constant 0 : index
    %c0_20 = arith.constant 0 : index
    %31 = vector.load %arg4[%c0_19, %c0_20] : memref<8x128xf32, #tpu.memory_space<vmem>>, vector<8x128xf32>
    tpu.vector_store %arg4[%c0_19, %c0_20], %30 {strides = array<i32>} : memref<8x128xf32, #tpu.memory_space<vmem>>, vector<8x128xf32>,
    return
  }
  func.func @transform_0(%arg0: i32) -> (i32, i32) {
    %c0_i32 = arith.constant 0 : i32
    %c0_i32_0 = arith.constant 0 : i32
    return %arg0, %c0_i32 : i32, i32
  }
  func.func @transform_1(%arg0: i32) -> (i32, i32, i32) {
    %c0_i32 = arith.constant 0 : i32
    %c0_i32_0 = arith.constant 0 : i32
    %c0_i32_1 = arith.constant 0 : i32
    %c0_i32_2 = arith.constant 0 : i32
    return %c0_i32, %c0_i32_0, %c0_i32_1 : i32, i32, i32
  }
  func.func @transform_2(%arg0: i32) -> (i32, i32) {
    %c0_i32 = arith.constant 0 : i32
    %c0_i32_0 = arith.constant 0 : i32
    %c0_i32_1 = arith.constant 0 : i32
    return %c0_i32, %c0_i32_0 : i32, i32
  }
  func.func @transform_3(%arg0: i32) -> (i32, i32) {
    %c0_i32 = arith.constant 0 : i32
    %c0_i32_0 = arith.constant 0 : i32
    return %arg0, %c0_i32 : i32, i32
  }
}

</mosaic_0001>

<bundles_post_ra>
// kernel: _net_forward_packed.1
= control target key start
LH: loop header
LB: loop body
LE: loop exit
PB: predicated region body
PF: predicated region fallthrough
CT: control target
= control target key end

     0   :  { %8 = vsyncpa [#allocation3], 0  ;;  %s695_s0 = inlined_call_operand.hbm [shape: f32[8,128], index: 0, kind: input, shape index: {}]   ;;  %s696_s1 = inlined_call_operand.hbm [shape: f32[3,128,128], index: 1, kind: input, shape index: {}]   ;;  %s697_s2 = inlined_call_operand.hbm [shape: f32[8,128], index: 2, kind: input, shape index: {}]   ;;  %s698_s3 = inlined_call_operand.hbm [shape: f32[8,128], index: 3, kind: output, shape index: {}]  }
   0x1   :  { %9 = vsyncpa [#allocation6], 0 }
   0x2   :  { %10 = vsyncpa [#allocation4], 0  ;;  %s601_s12 = smov [#allocation5]  }
   0x3   :  { %s26_s13 = sshll.u32 %s601_s12, 4  ;;  %s27_s13 = int_to_ptr.vmem [resolvable:$true] %s26_s13 }
   0x4   :  { %s523_s14 = scalar_lea.vmem %s27_s13, 6144  ;;  %p528_p1 = scmp.lt.s32.totalorder %s27_s13, %s27_s13 }
   0x5   :  { %p524_p0 = scmp.ne.s32.totalorder %s27_s13, %s523_s14  ;;  %p529_p2 = scmp.lt.s32.totalorder %s523_s14, %s523_s14 }
   0x7   :  { %p530_p3 = por %p529_p2, %p528_p1 }
   0x9   :  { %p531_p4 = pnand %p530_p3, %p524_p0 }
   0xb   :  { %534 = shalt.err (!%p531_p4)
}
   0xc   :  { %s602_s15 = smov 128   ;;  %s603_s16 = smov 8  }
   0xd   :  { %32 = dma.hbm_to_vmem [thread:$0]  %s696_s1, 6144, %s27_s13, [#allocation6], %s602_s15, %s602_s15, %s603_s16  }
   0xe   :  { %s604_s19 = smov [#allocation2]   ;;  %s605_s21 = smov [#allocation7]  }
   0xf   :  { %s17_s20 = sshll.u32 %s604_s19, 4  ;;  %s39_s22 = sshll.u32 %s605_s21, 4  ;;  %s18_s20 = int_to_ptr.vmem [resolvable:$true] %s17_s20  ;;  %s40_s22 = int_to_ptr.vmem [resolvable:$true] %s39_s22 }
  0x10   :  { %s543_s23 = scalar_lea.vmem %s18_s20, 128  ;;  %p548_p6 = scmp.lt.s32.totalorder %s18_s20, %s18_s20 }
  0x11   :  { %p544_p5 = scmp.ne.s32.totalorder %s18_s20, %s543_s23  ;;  %p549_p7 = scmp.lt.s32.totalorder %s543_s23, %s543_s23 }
  0x13   :  { %p550_p8 = por %p549_p7, %p548_p6 }
  0x15   :  { %p551_p9 = pnand %p550_p8, %p544_p5 }
  0x17   :  { %554 = shalt.err (!%p551_p9)
}
  0x18   :  { %20 = dma.hbm_to_vmem [thread:$0]  %s695_s0, 128, %s18_s20, [#allocation3]  }
  0x19   :  { %s563_s26 = scalar_lea.vmem %s40_s22, 128  ;;  %p568_p11 = scmp.lt.s32.totalorder %s40_s22, %s40_s22 }
  0x1a   :  { %p564_p10 = scmp.ne.s32.totalorder %s40_s22, %s563_s26  ;;  %p569_p12 = scmp.lt.s32.totalorder %s563_s26, %s563_s26 }
  0x1c   :  { %p570_p13 = por %p569_p12, %p568_p11 }
  0x1e   :  { %p571_p0 = pnand %p570_p13, %p564_p10 }
  0x20   :  { %574 = shalt.err (!%p571_p0)
}
  0x21   :  { %42 = dma.hbm_to_vmem [thread:$0]  %s697_s2, 128, %s40_s22, [#allocation6]  }
  0x22   :  { %595 = dma.done.wait [#allocation3], 128  }
  0x23   :  { %596 = vsyncadd [#allocation3], 4294967168 }
  0x24   :  { %597 = dma.done.wait [#allocation6], 6272  }
  0x25   :  { %598 = vsyncadd [#allocation6], 4294961024  ;;  %v606_v0 = vmov 0.0   ;;  %vm607_vm0 = vmmov 0   ;;  %v68_v1 = vld [vmem:[#allocation5 + $0x78] sm:$0xff]  ;;  %v67_v2 = vld [vmem:[#allocation5 + $0x70] sm:$0xff] }
  0x26   :  { %402 = vmatprep.subr.mxu0 %v606_v0  ;;  %434 = vmatprep.mubr.msk.f32.mxu0 %vm607_vm0, %v606_v0  ;;  %v66_v3 = vld [vmem:[#allocation5 + $0x68] sm:$0xff]  ;;  %v65_v4 = vld [vmem:[#allocation5 + $0x60] sm:$0xff]  ;;  %v161_v5 = vld [vmem:[#allocation5 + $0xf8] sm:$0xff]  ;;  %s608_s0 = smov [#allocation8]  }
  0x27   :  { %437 = vmatprep.subr.mxu1 %v606_v0  ;;  %469 = vmatprep.mubr.msk.f32.mxu1 %vm607_vm0, %v606_v0  ;;  %v64_v6 = vld [vmem:[#allocation5 + $0x58] sm:$0xff]  ;;  %v160_v7 = vld [vmem:[#allocation5 + $0xf0] sm:$0xff]  ;;  %v159_v8 = vld [vmem:[#allocation5 + $0xe8] sm:$0xff]  ;;  %s338_s2 = sshll.u32 %s608_s0, 4  ;;  %s339_s2 = int_to_ptr.vmem [resolvable:$true] %s338_s2 }
  0x28   :  { %403 = vmatpush3.msra.mxu0 %v68_v1  ;;  %438 = vmatpush3.msra.mxu1 %v161_v5  ;;  %v63_v9 = vld [vmem:[#allocation5 + $0x50] sm:$0xff]  ;;  %v158_v10 = vld [vmem:[#allocation5 + $0xe0] sm:$0xff]  ;;  %v62_v11 = vld [vmem:[#allocation5 + $0x48] sm:$0xff]  ;;  %s575_s28 = scalar_lea.vmem %s339_s2, 128  ;;  %p580_p2 = scmp.lt.s32.totalorder %s339_s2, %s339_s2 }
  0x29   :  { %404 = vmatprep.subr.mxu0 %v606_v0  ;;  %439 = vmatprep.subr.mxu1 %v606_v0  ;;  %v157_v12 = vld [vmem:[#allocation5 + $0xd8] sm:$0xff]  ;;  %v61_v13 = vld [vmem:[#allocation5 + $0x40] sm:$0xff]  ;;  %v156_v14 = vld [vmem:[#allocation5 + $0xd0] sm:$0xff]  ;;  %p576_p1 = scmp.ne.s32.totalorder %s339_s2, %s575_s28  ;;  %p581_p3 = scmp.lt.s32.totalorder %s575_s28, %s575_s28 }
  0x2a   :  { %405 = vmatpush3.msra.mxu0 %v67_v2  ;;  %440 = vmatpush3.msra.mxu1 %v160_v7  ;;  %v60_v15 = vld [vmem:[#allocation5 + $0x38] sm:$0xff]  ;;  %v155_v16 = vld [vmem:[#allocation5 + $0xc8] sm:$0xff]  ;;  %v59_v17 = vld [vmem:[#allocation5 + $0x30] sm:$0xff] }
  0x2b   :  { %406 = vmatprep.subr.mxu0 %v606_v0  ;;  %441 = vmatprep.subr.mxu1 %v606_v0  ;;  %v154_v18 = vld [vmem:[#allocation5 + $0xc0] sm:$0xff]  ;;  %v58_v19 = vld [vmem:[#allocation5 + $0x28] sm:$0xff]  ;;  %v153_v20 = vld [vmem:[#allocation5 + $0xb8] sm:$0xff]  ;;  %p582_p4 = por %p581_p3, %p580_p2 }
  0x2c   :  { %407 = vmatpush3.msra.mxu0 %v66_v3  ;;  %442 = vmatpush3.msra.mxu1 %v159_v8  ;;  %v57_v21 = vld [vmem:[#allocation5 + $0x20] sm:$0xff]  ;;  %v152_v22 = vld [vmem:[#allocation5 + $0xb0] sm:$0xff]  ;;  %v56_v23 = vld [vmem:[#allocation5 + $0x18] sm:$0xff] }
  0x2d   :  { %408 = vmatprep.subr.mxu0 %v606_v0  ;;  %443 = vmatprep.subr.mxu1 %v606_v0  ;;  %v151_v24 = vld [vmem:[#allocation5 + $0xa8] sm:$0xff]  ;;  %v55_v25 = vld [vmem:[#allocation5 + $0x10] sm:$0xff]  ;;  %v150_v26 = vld [vmem:[#allocation5 + $0xa0] sm:$0xff]  ;;  %p583_p5 = pnand %p582_p4, %p576_p1 }
  0x2e   :  { %409 = vmatpush3.msra.mxu0 %v65_v4  ;;  %444 = vmatpush3.msra.mxu1 %v158_v10  ;;  %v54_v27 = vld [vmem:[#allocation5 + $0x8] sm:$0xff]  ;;  %v149_v28 = vld [vmem:[#allocation5 + $0x98] sm:$0xff]  ;;  %v53_v29 = vld [vmem:[#allocation5] sm:$0xff] }
  0x2f   :  { %410 = vmatprep.subr.mxu0 %v606_v0  ;;  %445 = vmatprep.subr.mxu1 %v606_v0  ;;  %v52_v30 = vld [vmem:[#allocation2] sm:$0xff]  ;;  %v148_v31 = vld [vmem:[#allocation5 + $0x90] sm:$0xff]  ;;  %v147_v32 = vld [vmem:[#allocation5 + $0x88] sm:$0xff] }
  0x30   :  { %411 = vmatpush3.msra.mxu0 %v64_v6  ;;  %446 = vmatpush3.msra.mxu1 %v157_v12  ;;  %v146_v33 = vld [vmem:[#allocation5 + $0x80] sm:$0xff]  ;;  %v254_v34 = vld [vmem:[#allocation5 + $0x178] sm:$0xff]  ;;  %v253_v35 = vld [vmem:[#allocation5 + $0x170] sm:$0xff] }
  0x31   :  { %412 = vmatprep.subr.mxu0 %v606_v0  ;;  %447 = vmatprep.subr.mxu1 %v606_v0  ;;  %v252_v36 = vld [vmem:[#allocation5 + $0x168] sm:$0xff]  ;;  %v251_v37 = vld [vmem:[#allocation5 + $0x160] sm:$0xff]  ;;  %v250_v38 = vld [vmem:[#allocation5 + $0x158] sm:$0xff] }
  0x32   :  { %413 = vmatpush3.msra.mxu0 %v63_v9  ;;  %448 = vmatpush3.msra.mxu1 %v156_v14  ;;  %v249_v39 = vld [vmem:[#allocation5 + $0x150] sm:$0xff]  ;;  %v248_v40 = vld [vmem:[#allocation5 + $0x148] sm:$0xff]  ;;  %v247_v41 = vld [vmem:[#allocation5 + $0x140] sm:$0xff] }
  0x33   :  { %414 = vmatprep.subr.mxu0 %v606_v0  ;;  %449 = vmatprep.subr.mxu1 %v606_v0  ;;  %v246_v42 = vld [vmem:[#allocation5 + $0x138] sm:$0xff]  ;;  %v245_v43 = vld [vmem:[#allocation5 + $0x130] sm:$0xff]  ;;  %v244_v44 = vld [vmem:[#allocation5 + $0x128] sm:$0xff] }
  0x34   :  { %415 = vmatpush3.msra.mxu0 %v62_v11  ;;  %450 = vmatpush3.msra.mxu1 %v155_v16  ;;  %v243_v45 = vld [vmem:[#allocation5 + $0x120] sm:$0xff]  ;;  %v242_v46 = vld [vmem:[#allocation5 + $0x118] sm:$0xff]  ;;  %v241_v52 = vld [vmem:[#allocation5 + $0x110] sm:$0xff] }
  0x35   :  { %416 = vmatprep.subr.mxu0 %v606_v0  ;;  %451 = vmatprep.subr.mxu1 %v606_v0  ;;  %v348_v47 = vld [vmem:[#allocation7] ss:$0 sm:$0xff]  ;;  %v240_v53 = vld [vmem:[#allocation5 + $0x108] sm:$0xff]  ;;  %v349_v55 = vld [vmem:[#allocation7 + $0x1] ss:$0 sm:$0xff] }
  0x36   :  { %417 = vmatpush3.msra.mxu0 %v61_v13  ;;  %452 = vmatpush3.msra.mxu1 %v154_v18  ;;  %v239_v54 = vld [vmem:[#allocation5 + $0x100] sm:$0xff] }
  0x37   :  { %418 = vmatprep.subr.mxu0 %v606_v0  ;;  %453 = vmatprep.subr.mxu1 %v606_v0  ;;  %v350_v60 = vld [vmem:[#allocation7 + $0x2] ss:$0 sm:$0xff] }
  0x38   :  { %419 = vmatpush3.msra.mxu0 %v60_v15  ;;  %454 = vmatpush3.msra.mxu1 %v153_v20 }
  0x39   :  { %420 = vmatprep.subr.mxu0 %v606_v0  ;;  %455 = vmatprep.subr.mxu1 %v606_v0 }
  0x3a   :  { %421 = vmatpush3.msra.mxu0 %v59_v17  ;;  %456 = vmatpush3.msra.mxu1 %v152_v22 }
  0x3b   :  { %422 = vmatprep.subr.mxu0 %v606_v0  ;;  %457 = vmatprep.subr.mxu1 %v606_v0 }
  0x3c   :  { %423 = vmatpush3.msra.mxu0 %v58_v19  ;;  %458 = vmatpush3.msra.mxu1 %v151_v24 }
  0x3d   :  { %424 = vmatprep.subr.mxu0 %v606_v0  ;;  %459 = vmatprep.subr.mxu1 %v606_v0 }
  0x3e   :  { %425 = vmatpush3.msra.mxu0 %v57_v21  ;;  %460 = vmatpush3.msra.mxu1 %v150_v26 }
  0x3f   :  { %426 = vmatprep.subr.mxu0 %v606_v0  ;;  %461 = vmatprep.subr.mxu1 %v606_v0 }
  0x40   :  { %427 = vmatpush3.msra.mxu0 %v56_v23  ;;  %462 = vmatpush3.msra.mxu1 %v149_v28 }
  0x41   :  { %428 = vmatprep.subr.mxu0 %v606_v0  ;;  %463 = vmatprep.subr.mxu1 %v606_v0 }
  0x42   :  { %429 = vmatpush3.msra.mxu0 %v55_v25  ;;  %464 = vmatpush3.msra.mxu1 %v148_v31 }
  0x43   :  { %430 = vmatprep.subr.mxu0 %v606_v0  ;;  %465 = vmatprep.subr.mxu1 %v606_v0 }
  0x44   :  { %431 = vmatpush3.msra.mxu0 %v54_v27  ;;  %466 = vmatpush3.msra.mxu1 %v147_v32 }
  0x45   :  { %432 = vmatprep.subr.mxu0 %v606_v0  ;;  %467 = vmatprep.subr.mxu1 %v606_v0 }
  0x46   :  { %433 = vmatpush3.msra.mxu0 %v53_v29  ;;  %468 = vmatpush3.msra.mxu1 %v146_v33 }
  0x47   :  { %435 = vmatmul.mubr.f32.vlgmr.msra.gmra.mxu0 %v52_v30  ;;  %472 = vmatprep.subr.mxu0 %v606_v0 }
  0x48   :  { %504 = vmatprep.mubr.msk.f32.mxu0 %vm607_vm0, %v606_v0  ;;  %473 = vmatpush3.msra.mxu0 %v254_v34 }
  0x49   :  { %474 = vmatprep.subr.mxu0 %v606_v0 }
  0x4a   :  { %475 = vmatpush3.msra.mxu0 %v253_v35 }
  0x4b   :  { %476 = vmatprep.subr.mxu0 %v606_v0 }
  0x4c   :  { %477 = vmatpush3.msra.mxu0 %v252_v36 }
  0x4d   :  { %478 = vmatprep.subr.mxu0 %v606_v0 }
  0x4e   :  { %479 = vmatpush3.msra.mxu0 %v251_v37 }
  0x4f   :  { %480 = vmatprep.subr.mxu0 %v606_v0 }
  0x50   :  { %481 = vmatpush3.msra.mxu0 %v250_v38 }
  0x51   :  { %482 = vmatprep.subr.mxu0 %v606_v0 }
  0x52   :  { %483 = vmatpush3.msra.mxu0 %v249_v39 }
  0x53   :  { %484 = vmatprep.subr.mxu0 %v606_v0 }
  0x54   :  { %485 = vmatpush3.msra.mxu0 %v248_v40 }
  0x55   :  { %486 = vmatprep.subr.mxu0 %v606_v0 }
  0x56   :  { %487 = vmatpush3.msra.mxu0 %v247_v41 }
  0x57   :  { %488 = vmatprep.subr.mxu0 %v606_v0 }
  0x58   :  { %489 = vmatpush3.msra.mxu0 %v246_v42 }
  0x59   :  { %490 = vmatprep.subr.mxu0 %v606_v0 }
  0x5a   :  { %491 = vmatpush3.msra.mxu0 %v245_v43 }
  0x5b   :  { %492 = vmatprep.subr.mxu0 %v606_v0 }
  0x5c   :  { %493 = vmatpush3.msra.mxu0 %v244_v44 }
  0x5d   :  { %494 = vmatprep.subr.mxu0 %v606_v0 }
  0x5e   :  { %495 = vmatpush3.msra.mxu0 %v243_v45 }
  0x5f   :  { %496 = vmatprep.subr.mxu0 %v606_v0 }
  0x60   :  { %497 = vmatpush3.msra.mxu0 %v242_v46 }
  0x61   :  { %498 = vmatprep.subr.mxu0 %v606_v0 }
  0x62   :  { %499 = vmatpush3.msra.mxu0 %v241_v52 }
  0x63   :  { %500 = vmatprep.subr.mxu0 %v606_v0 }
  0x64   :  { %501 = vmatpush3.msra.mxu0 %v240_v53 }
  0x65   :  { %502 = vmatprep.subr.mxu0 %v606_v0 }
  0x66   :  { %503 = vmatpush3.msra.mxu0 %v239_v54 }
 0x107   :  { %v140_v48 = vpop.f32.mrf.mxu0 }
 0x108   :  { %v141_v49 = vadd.f32 %v348_v47, %v140_v48 }
 0x109   :  { %v436_v50 = vpop.f32.mrf.mxu0 }
 0x10a   :  { %v144_v51 = vmax.f32 %v141_v49, 0.0 }
 0x10c   :  { %470 = vmatmul.mubr.f32.vlgmr.msra.gmra.mxu1 %v144_v51 }
 0x1cc   :  { %v233_v56 = vpop.f32.mrf.mxu1 }
 0x1cd   :  { %v234_v57 = vadd.f32 %v349_v55, %v233_v56 }
 0x1ce   :  { %v471_v58 = vpop.f32.mrf.mxu1 }
 0x1cf   :  { %v237_v59 = vmax.f32 %v234_v57, 0.0 }
 0x1d1   :  { %505 = vmatmul.mubr.f32.vlgmr.msra.gmra.mxu0 %v237_v59 }
 0x291   :  { %v326_v61 = vpop.f32.mrf.mxu0 }
 0x292   :  { %v327_v62 = vadd.f32 %v350_v60, %v326_v61 }
 0x293   :  { %v506_v63 = vpop.f32.mrf.mxu0 }
 0x294   :  { %v330_v1 = vmax.f32 %v327_v62, 0.0 }
 0x296   :  { %331 = vst [vmem:[#allocation8] sm:$0xff] %v330_v1 }
 0x297   :  { %586 = shalt.err (!%p583_p5)
}
 0x298   :  { %341 = dma.vmem_to_hbm [thread:$0]  %s339_s2, 128, %s698_s3, [#allocation4]  }
 0x299   :  { %599 = dma.done.wait [#allocation4], 128  }
 0x29a   :  { %600 = vsyncadd [#allocation4], 4294967168 }
 0x29b   :  { %345 = vsyncpa [#allocation3], 1 }
 0x29c   :  { %346 = vsyncpa [#allocation6], 1 }
 0x29d   :  { %347 = vsyncpa [#allocation4], 1 }

</bundles_post_ra>
